<compile_context>
chip_gen: v6e
topology: v6e:2x2x1
jax: 0.10.0
libtpu: 0.0.40
codegen_flags: <defaults>
</compile_context>

<pallas_src>
import jax
import jax.numpy as jnp
from jax import lax
from jax.experimental import pallas as pl
from jax.experimental.pallas import tpu as pltpu


def make_linear_kernel(n_plain, rank):
    """Ref order: idsT, xdenseT, tcat_t, s1_t, s2_t, s3_m, w_t, out."""

    def kernel(idsT_ref, xdenseT_ref, tcat_ref, s1t_ref, s2t_ref, s3m_ref, wt_ref, out_ref):
        TB = out_ref.shape[1]
        sum_v = tcat_ref.shape[1]
        d1 = s1t_ref.shape[1]
        d2 = s2t_ref.shape[1]
        d3 = s3m_ref.shape[1]

        # ---- plain sparse features: one fused multi-hot (sum_V, TB) against (1, sum_V) ----
        # ids were pre-offset into the concatenated table in the wrapper, so the per-feature
        # one-hots never collide and summing them gives the exact multi-hot selector.
        iota_v = lax.broadcasted_iota(jnp.int32, (sum_v, TB), 0)
        mh = (iota_v == idsT_ref[0:1, :]).astype(jnp.float32)
        for f in range(1, n_plain):
            mh = mh + (iota_v == idsT_ref[f:f + 1, :]).astype(jnp.float32)
        logit = jnp.dot(tcat_ref[...], mh, preferred_element_type=jnp.float32)      # (1, TB)

        # ---- dense features: (1, D) @ (D, TB) ----
        logit = logit + jnp.dot(wt_ref[...], xdenseT_ref[...],
                                preferred_element_type=jnp.float32)                  # (1, TB)

        # ---- TTD sparse feature: contract TT cores against the mode one-hots --------
        # PyTorch reconstructs T = s1 . s2 . s3 (row-major reshape) and indexes row x.
        # Equivalent math: ttd[b] = sum_{a,c} s1[0,i,a] * s2[a,j,c] * s3[c,k,0].
        oh_i = (lax.broadcasted_iota(jnp.int32, (d1, TB), 0)
                == idsT_ref[n_plain:n_plain + 1, :]).astype(jnp.float32)
        oh_j = (lax.broadcasted_iota(jnp.int32, (d2, TB), 0)
                == idsT_ref[n_plain + 1:n_plain + 2, :]).astype(jnp.float32)
        oh_k = (lax.broadcasted_iota(jnp.int32, (d3, TB), 0)
                == idsT_ref[n_plain + 2:n_plain + 3, :]).astype(jnp.float32)

        v1 = jnp.dot(s1t_ref[...], oh_i, preferred_element_type=jnp.float32)         # (r,   TB)
        m2 = jnp.dot(s2t_ref[...], oh_j, preferred_element_type=jnp.float32)         # (r*r, TB)
        v3 = jnp.dot(s3m_ref[...], oh_k, preferred_element_type=jnp.float32)         # (r,   TB)

        # Fully unrolled rank*rank per-lane FMA epilogue (VPU only, no XLU reductions).
        ttd = v1[0:1, :] * m2[0:1, :] * v3[0:1, :]
        for a in range(rank):
            for c in range(rank):
                if a == 0 and c == 0:
                    continue
                idx = a * rank + c
                ttd = ttd + v1[a:a + 1, :] * m2[idx:idx + 1, :] * v3[c:c + 1, :]

        out_ref[...] = logit + ttd                                                    # (1, TB)

    return kernel


def linear_forward(X, params, cfg):
    """Pallas implementation of Linear.forward (no varlen feats, no refine weight)."""
    vocabs = cfg["vocabs"]
    d1, d2, d3 = cfg["ttd_dims"]
    rank = cfg["ttd_rank"]
    n_plain = len(vocabs)
    n_groups = n_plain + 3
    B = X.shape[0]

    # Batch tile: lane-multiple, widened (up to 512) for large batches to amortize the
    # ~0.35us/step grid overhead and keep the output store unmasked & lane-dense.
    b_rounded = ((B + 127) // 128) * 128
    tb = min(512, b_rounded)
    B_pad = ((B + tb - 1) // tb) * tb
    grid = (B_pad // tb,)

    # ---- glue: slice the stacked feature matrix exactly like feature_index does ----
    sparse_idx = X[:, :n_plain].astype(jnp.int32)                          # (B, n_plain)
    offsets = [0]
    for v in vocabs[:-1]:
        offsets.append(offsets[-1] + v)
    plain_ids = sparse_idx + jnp.asarray(offsets, jnp.int32)[None, :]      # offset into Tcat

    ttd_flat = X[:, n_plain].astype(jnp.int32)                             # (B,)
    i = ttd_flat // (d2 * d3)
    j = (ttd_flat // d3) % d2
    k = ttd_flat % d3
    ids = jnp.concatenate([plain_ids, jnp.stack([i, j, k], axis=1)], axis=1)  # (B, n_groups)

    x_dense = X[:, n_plain + 1:].astype(jnp.float32)                       # (B, D_dense)
    D_dense = x_dense.shape[1]

    # transpose + zero-pad the batch so it lives on the (lane-dense) minor dim
    idsT = jnp.zeros((n_groups, B_pad), jnp.int32).at[:, :B].set(ids.T)
    xdenseT = jnp.zeros((D_dense, B_pad), jnp.float32).at[:, :B].set(x_dense.T)

    # tables, pre-transposed so every in-kernel matmul keeps the batch tile on the lanes
    tcat_t = jnp.concatenate([params[f"emb{f}"] for f in range(n_plain)], axis=0).T   # (1, sum_V)
    sum_v = tcat_t.shape[1]
    s1_t = params["s1"][0].T                                               # (r, d1)
    s2_t = jnp.transpose(params["s2"], (0, 2, 1)).reshape(rank * rank, d2)  # (r*r, d2)
    s3_m = params["s3"][:, :, 0]                                           # (r, d3)
    w_t = params["w"].T                                                    # (1, D_dense)

    kernel = make_linear_kernel(n_plain, rank)
    out = pl.pallas_call(
        kernel,
        out_shape=jax.ShapeDtypeStruct((1, B_pad), jnp.float32),
        grid=grid,
        in_specs=[
            pl.BlockSpec((n_groups, tb), lambda g: (0, g)),        # per-tile ids
            pl.BlockSpec((D_dense, tb), lambda g: (0, g)),         # per-tile dense values
            pl.BlockSpec((1, sum_v), lambda g: (0, 0)),            # resident tables ↓
            pl.BlockSpec((rank, d1), lambda g: (0, 0)),
            pl.BlockSpec((rank * rank, d2), lambda g: (0, 0)),
            pl.BlockSpec((rank, d3), lambda g: (0, 0)),
            pl.BlockSpec((1, D_dense), lambda g: (0, 0)),
        ],
        out_specs=pl.BlockSpec((1, tb), lambda g: (0, g)),
        compiler_params=pltpu.CompilerParams(
            dimension_semantics=("parallel",),
            vmem_limit_bytes=32 * 1024 * 1024,
        ),
    )(idsT, xdenseT, tcat_t, s1_t, s2_t, s3_m, w_t)

    return out[0, :B][:, None]                                             # (B, 1)


def reference_forward(X, params, cfg):
    """Pure-JAX transcription of the PyTorch forward, for verification."""
    vocabs = cfg["vocabs"]
    d1, d2, d3 = cfg["ttd_dims"]
    n_plain = len(vocabs)

    idx = X[:, :n_plain].astype(jnp.int32)
    ttd_flat = X[:, n_plain].astype(jnp.int32)
    x_dense = X[:, n_plain + 1:].astype(jnp.float32)

    # TTD table reconstruction exactly as in torch (tensordot, tensordot, reshape)
    temp = jnp.tensordot(params["s1"], params["s2"], axes=([-1], [0]))     # (1,d1,d2,r)
    temp = jnp.tensordot(temp, params["s3"], axes=([-1], [0]))             # (1,d1,d2,d3,1)
    ttd_table = jnp.squeeze(temp).reshape(-1, 1)                           # (d1*d2*d3, 1)

    sparse_cols = [params[f"emb{f}"][idx[:, f], 0] for f in range(n_plain)]
    sparse_cols.append(ttd_table[ttd_flat, 0])
    sparse_logit = jnp.sum(jnp.stack(sparse_cols, axis=-1), axis=-1, keepdims=True)
    dense_logit = x_dense @ params["w"]
    return sparse_logit + dense_logit


if __name__ == "__main__":
    key = jax.random.PRNGKey(0)
    B = 8
    cfg = {
        "vocabs": (11, 7),          # two plain sparse features
        "ttd_dims": (2, 3, 4),      # feat_dims[1:4] of the TTD-factorized feature
        "ttd_rank": 3,
        "dense_dims": (3, 5),       # two dense features -> D_dense = 8
    }
    D_dense = sum(cfg["dense_dims"])
    d1, d2, d3 = cfg["ttd_dims"]
    rank = cfg["ttd_rank"]
    init_std = 0.05

    ks = jax.random.split(key, 10)
    params = {
        "emb0": init_std * jax.random.normal(ks[0], (cfg["vocabs"][0], 1), jnp.float32),
        "emb1": init_std * jax.random.normal(ks[1], (cfg["vocabs"][1], 1), jnp.float32),
        "s1": (init_std / 3) * jax.random.normal(ks[2], (1, d1, rank), jnp.float32),
        "s2": (init_std / 3) * jax.random.normal(ks[3], (rank, d2, rank), jnp.float32),
        "s3": (init_std / 3) * jax.random.normal(ks[4], (rank, d3, 1), jnp.float32),  # min(rank,1)=1 (linear)
        "w": init_std * jax.random.normal(ks[5], (D_dense, 1), jnp.float32),
    }

    # Build X = [sparse0_id, sparse1_id, ttd_id, dense(8)]  -> (B, 11)
    idx0 = jax.random.randint(ks[6], (B, 1), 0, cfg["vocabs"][0])
    idx1 = jax.random.randint(ks[7], (B, 1), 0, cfg["vocabs"][1])
    idxt = jax.random.randint(ks[8], (B, 1), 0, d1 * d2 * d3)
    xden = jax.random.normal(ks[9], (B, D_dense), jnp.float32)
    X = jnp.concatenate(
        [idx0.astype(jnp.float32), idx1.astype(jnp.float32), idxt.astype(jnp.float32), xden],
        axis=1,
    )

    out = linear_forward(X, params, cfg)
    out = jax.block_until_ready(out)

    ref = reference_forward(X, params, cfg)
    assert out.shape == (B, 1)
    assert jnp.allclose(out, ref, rtol=1e-5, atol=1e-6), (out, ref)
    print("KERNEL_OK")
</pallas_src>

<mosaic_0001>
module attributes {stable_mosaic.version = 11 : i64} {
  func.func @kernel(%arg0: i32, %arg1: memref<5x128xi32, #tpu.memory_space<vmem>>, %arg2: memref<8x128xf32, #tpu.memory_space<vmem>>, %arg3: memref<1x18xf32, #tpu.memory_space<vmem>>, %arg4: memref<3x2xf32, #tpu.memory_space<vmem>>, %arg5: memref<9x3xf32, #tpu.memory_space<vmem>>, %arg6: memref<3x4xf32, #tpu.memory_space<vmem>>, %arg7: memref<1x8xf32, #tpu.memory_space<vmem>>, %arg8: memref<1x128xf32, #tpu.memory_space<vmem>>) attributes {dimension_semantics = [#tpu.dimension_semantics<parallel>], iteration_bounds = array<i64: 1>, scalar_prefetch = 0 : i64, scratch_operands = 0 : i64, tpu.core_type = #tpu.core_type<tc>, window_params = [{transform_indices = @transform_0, window_bounds = array<i64: 5, 128>}, {transform_indices = @transform_1, window_bounds = array<i64: 8, 128>}, {pipeline_mode = #tpu.pipeline_mode<synchronous>, transform_indices = @transform_2, window_bounds = array<i64: 1, 18>}, {pipeline_mode = #tpu.pipeline_mode<synchronous>, transform_indices = @transform_3, window_bounds = array<i64: 3, 2>}, {pipeline_mode = #tpu.pipeline_mode<synchronous>, transform_indices = @transform_4, window_bounds = array<i64: 9, 3>}, {pipeline_mode = #tpu.pipeline_mode<synchronous>, transform_indices = @transform_5, window_bounds = array<i64: 3, 4>}, {pipeline_mode = #tpu.pipeline_mode<synchronous>, transform_indices = @transform_6, window_bounds = array<i64: 1, 8>}, {transform_indices = @transform_7, window_bounds = array<i64: 1, 128>}]} {
    %0 = tpu.iota {dimensions = array<i32: 0>} : vector<18x128xi32>
    %c0 = arith.constant 0 : index
    %c0_0 = arith.constant 0 : index
    %1 = vector.load %arg1[%c0, %c0_0] : memref<5x128xi32, #tpu.memory_space<vmem>>, vector<1x128xi32>
    %2 = vector.broadcast %1 : vector<1x128xi32> to vector<18x128xi32>
    %3 = arith.cmpi eq, %0, %2 : vector<18x128xi32>
    %4 = arith.extui %3 : vector<18x128xi1> to vector<18x128xi32>
    %5 = arith.sitofp %4 : vector<18x128xi32> to vector<18x128xf32>
    %c1 = arith.constant 1 : index
    %c0_1 = arith.constant 0 : index
    %6 = vector.load %arg1[%c1, %c0_1] : memref<5x128xi32, #tpu.memory_space<vmem>>, vector<1x128xi32>
    %7 = vector.broadcast %6 : vector<1x128xi32> to vector<18x128xi32>
    %8 = arith.cmpi eq, %0, %7 : vector<18x128xi32>
    %9 = arith.extui %8 : vector<18x128xi1> to vector<18x128xi32>
    %10 = arith.sitofp %9 : vector<18x128xi32> to vector<18x128xf32>
    %11 = arith.addf %5, %10 : vector<18x128xf32>
    %c0_2 = arith.constant 0 : index
    %c0_3 = arith.constant 0 : index
    %12 = vector.load %arg3[%c0_2, %c0_3] : memref<1x18xf32, #tpu.memory_space<vmem>>, vector<1x18xf32>
    %cst = arith.constant dense<0.000000e+00> : vector<1x128xf32>
    %13 = tpu.matmul %12, %11, %cst {dimension_numbers = #tpu.dot_dimension_numbers<[1], [0], [0], [1], [0, 0, 1, 1], [], []>} : vector<1x18xf32>, vector<18x128xf32>, vector<1x128xf32> -> vector<1x128xf32>
    %c0_4 = arith.constant 0 : index
    %c0_5 = arith.constant 0 : index
    %14 = vector.load %arg7[%c0_4, %c0_5] : memref<1x8xf32, #tpu.memory_space<vmem>>, vector<1x8xf32>
    %c0_6 = arith.constant 0 : index
    %c0_7 = arith.constant 0 : index
    %15 = vector.load %arg2[%c0_6, %c0_7] : memref<8x128xf32, #tpu.memory_space<vmem>>, vector<8x128xf32>
    %cst_8 = arith.constant dense<0.000000e+00> : vector<1x128xf32>
    %16 = tpu.matmul %14, %15, %cst_8 {dimension_numbers = #tpu.dot_dimension_numbers<[1], [0], [0], [1], [0, 0, 1, 1], [], []>} : vector<1x8xf32>, vector<8x128xf32>, vector<1x128xf32> -> vector<1x128xf32>
    %17 = arith.addf %13, %16 : vector<1x128xf32>
    %18 = tpu.iota {dimensions = array<i32: 0>} : vector<2x128xi32>
    %c2 = arith.constant 2 : index
    %c0_9 = arith.constant 0 : index
    %19 = vector.load %arg1[%c2, %c0_9] : memref<5x128xi32, #tpu.memory_space<vmem>>, vector<1x128xi32>
    %20 = vector.broadcast %19 : vector<1x128xi32> to vector<2x128xi32>
    %21 = arith.cmpi eq, %18, %20 : vector<2x128xi32>
    %22 = arith.extui %21 : vector<2x128xi1> to vector<2x128xi32>
    %23 = arith.sitofp %22 : vector<2x128xi32> to vector<2x128xf32>
    %24 = tpu.iota {dimensions = array<i32: 0>} : vector<3x128xi32>
    %c3 = arith.constant 3 : index
    %c0_10 = arith.constant 0 : index
    %25 = vector.load %arg1[%c3, %c0_10] : memref<5x128xi32, #tpu.memory_space<vmem>>, vector<1x128xi32>
    %26 = vector.broadcast %25 : vector<1x128xi32> to vector<3x128xi32>
    %27 = arith.cmpi eq, %24, %26 : vector<3x128xi32>
    %28 = arith.extui %27 : vector<3x128xi1> to vector<3x128xi32>
    %29 = arith.sitofp %28 : vector<3x128xi32> to vector<3x128xf32>
    %30 = tpu.iota {dimensions = array<i32: 0>} : vector<4x128xi32>
    %c4 = arith.constant 4 : index
    %c0_11 = arith.constant 0 : index
    %31 = vector.load %arg1[%c4, %c0_11] : memref<5x128xi32, #tpu.memory_space<vmem>>, vector<1x128xi32>
    %32 = vector.broadcast %31 : vector<1x128xi32> to vector<4x128xi32>
    %33 = arith.cmpi eq, %30, %32 : vector<4x128xi32>
    %34 = arith.extui %33 : vector<4x128xi1> to vector<4x128xi32>
    %35 = arith.sitofp %34 : vector<4x128xi32> to vector<4x128xf32>
    %c0_12 = arith.constant 0 : index
    %c0_13 = arith.constant 0 : index
    %36 = vector.load %arg4[%c0_12, %c0_13] : memref<3x2xf32, #tpu.memory_space<vmem>>, vector<3x2xf32>
    %cst_14 = arith.constant dense<0.000000e+00> : vector<3x128xf32>
    %37 = tpu.matmul %36, %23, %cst_14 {dimension_numbers = #tpu.dot_dimension_numbers<[1], [0], [0], [1], [0, 0, 1, 1], [], []>} : vector<3x2xf32>, vector<2x128xf32>, vector<3x128xf32> -> vector<3x128xf32>
    %c0_15 = arith.constant 0 : index
    %c0_16 = arith.constant 0 : index
    %38 = vector.load %arg5[%c0_15, %c0_16] : memref<9x3xf32, #tpu.memory_space<vmem>>, vector<9x3xf32>
    %cst_17 = arith.constant dense<0.000000e+00> : vector<9x128xf32>
    %39 = tpu.matmul %38, %29, %cst_17 {dimension_numbers = #tpu.dot_dimension_numbers<[1], [0], [0], [1], [0, 0, 1, 1], [], []>} : vector<9x3xf32>, vector<3x128xf32>, vector<9x128xf32> -> vector<9x128xf32>
    %c0_18 = arith.constant 0 : index
    %c0_19 = arith.constant 0 : index
    %40 = vector.load %arg6[%c0_18, %c0_19] : memref<3x4xf32, #tpu.memory_space<vmem>>, vector<3x4xf32>
    %cst_20 = arith.constant dense<0.000000e+00> : vector<3x128xf32>
    %41 = tpu.matmul %40, %35, %cst_20 {dimension_numbers = #tpu.dot_dimension_numbers<[1], [0], [0], [1], [0, 0, 1, 1], [], []>} : vector<3x4xf32>, vector<4x128xf32>, vector<3x128xf32> -> vector<3x128xf32>
    %42 = vector.extract_strided_slice %37 {offsets = [0, 0], sizes = [1, 128], strides = [1, 1]} : vector<3x128xf32> to vector<1x128xf32>
    %43 = vector.extract_strided_slice %39 {offsets = [0, 0], sizes = [1, 128], strides = [1, 1]} : vector<9x128xf32> to vector<1x128xf32>
    %44 = arith.mulf %42, %43 : vector<1x128xf32>
    %45 = vector.extract_strided_slice %41 {offsets = [0, 0], sizes = [1, 128], strides = [1, 1]} : vector<3x128xf32> to vector<1x128xf32>
    %46 = arith.mulf %44, %45 : vector<1x128xf32>
    %47 = vector.extract_strided_slice %37 {offsets = [0, 0], sizes = [1, 128], strides = [1, 1]} : vector<3x128xf32> to vector<1x128xf32>
    %48 = vector.extract_strided_slice %39 {offsets = [1, 0], sizes = [1, 128], strides = [1, 1]} : vector<9x128xf32> to vector<1x128xf32>
    %49 = arith.mulf %47, %48 : vector<1x128xf32>
    %50 = vector.extract_strided_slice %41 {offsets = [1, 0], sizes = [1, 128], strides = [1, 1]} : vector<3x128xf32> to vector<1x128xf32>
    %51 = arith.mulf %49, %50 : vector<1x128xf32>
    %52 = arith.addf %46, %51 : vector<1x128xf32>
    %53 = vector.extract_strided_slice %37 {offsets = [0, 0], sizes = [1, 128], strides = [1, 1]} : vector<3x128xf32> to vector<1x128xf32>
    %54 = vector.extract_strided_slice %39 {offsets = [2, 0], sizes = [1, 128], strides = [1, 1]} : vector<9x128xf32> to vector<1x128xf32>
    %55 = arith.mulf %53, %54 : vector<1x128xf32>
    %56 = vector.extract_strided_slice %41 {offsets = [2, 0], sizes = [1, 128], strides = [1, 1]} : vector<3x128xf32> to vector<1x128xf32>
    %57 = arith.mulf %55, %56 : vector<1x128xf32>
    %58 = arith.addf %52, %57 : vector<1x128xf32>
    %59 = vector.extract_strided_slice %37 {offsets = [1, 0], sizes = [1, 128], strides = [1, 1]} : vector<3x128xf32> to vector<1x128xf32>
    %60 = vector.extract_strided_slice %39 {offsets = [3, 0], sizes = [1, 128], strides = [1, 1]} : vector<9x128xf32> to vector<1x128xf32>
    %61 = arith.mulf %59, %60 : vector<1x128xf32>
    %62 = vector.extract_strided_slice %41 {offsets = [0, 0], sizes = [1, 128], strides = [1, 1]} : vector<3x128xf32> to vector<1x128xf32>
    %63 = arith.mulf %61, %62 : vector<1x128xf32>
    %64 = arith.addf %58, %63 : vector<1x128xf32>
    %65 = vector.extract_strided_slice %37 {offsets = [1, 0], sizes = [1, 128], strides = [1, 1]} : vector<3x128xf32> to vector<1x128xf32>
    %66 = vector.extract_strided_slice %39 {offsets = [4, 0], sizes = [1, 128], strides = [1, 1]} : vector<9x128xf32> to vector<1x128xf32>
    %67 = arith.mulf %65, %66 : vector<1x128xf32>
    %68 = vector.extract_strided_slice %41 {offsets = [1, 0], sizes = [1, 128], strides = [1, 1]} : vector<3x128xf32> to vector<1x128xf32>
    %69 = arith.mulf %67, %68 : vector<1x128xf32>
    %70 = arith.addf %64, %69 : vector<1x128xf32>
    %71 = vector.extract_strided_slice %37 {offsets = [1, 0], sizes = [1, 128], strides = [1, 1]} : vector<3x128xf32> to vector<1x128xf32>
    %72 = vector.extract_strided_slice %39 {offsets = [5, 0], sizes = [1, 128], strides = [1, 1]} : vector<9x128xf32> to vector<1x128xf32>
    %73 = arith.mulf %71, %72 : vector<1x128xf32>
    %74 = vector.extract_strided_slice %41 {offsets = [2, 0], sizes = [1, 128], strides = [1, 1]} : vector<3x128xf32> to vector<1x128xf32>
    %75 = arith.mulf %73, %74 : vector<1x128xf32>
    %76 = arith.addf %70, %75 : vector<1x128xf32>
    %77 = vector.extract_strided_slice %37 {offsets = [2, 0], sizes = [1, 128], strides = [1, 1]} : vector<3x128xf32> to vector<1x128xf32>
    %78 = vector.extract_strided_slice %39 {offsets = [6, 0], sizes = [1, 128], strides = [1, 1]} : vector<9x128xf32> to vector<1x128xf32>
    %79 = arith.mulf %77, %78 : vector<1x128xf32>
    %80 = vector.extract_strided_slice %41 {offsets = [0, 0], sizes = [1, 128], strides = [1, 1]} : vector<3x128xf32> to vector<1x128xf32>
    %81 = arith.mulf %79, %80 : vector<1x128xf32>
    %82 = arith.addf %76, %81 : vector<1x128xf32>
    %83 = vector.extract_strided_slice %37 {offsets = [2, 0], sizes = [1, 128], strides = [1, 1]} : vector<3x128xf32> to vector<1x128xf32>
    %84 = vector.extract_strided_slice %39 {offsets = [7, 0], sizes = [1, 128], strides = [1, 1]} : vector<9x128xf32> to vector<1x128xf32>
    %85 = arith.mulf %83, %84 : vector<1x128xf32>
    %86 = vector.extract_strided_slice %41 {offsets = [1, 0], sizes = [1, 128], strides = [1, 1]} : vector<3x128xf32> to vector<1x128xf32>
    %87 = arith.mulf %85, %86 : vector<1x128xf32>
    %88 = arith.addf %82, %87 : vector<1x128xf32>
    %89 = vector.extract_strided_slice %37 {offsets = [2, 0], sizes = [1, 128], strides = [1, 1]} : vector<3x128xf32> to vector<1x128xf32>
    %90 = vector.extract_strided_slice %39 {offsets = [8, 0], sizes = [1, 128], strides = [1, 1]} : vector<9x128xf32> to vector<1x128xf32>
    %91 = arith.mulf %89, %90 : vector<1x128xf32>
    %92 = vector.extract_strided_slice %41 {offsets = [2, 0], sizes = [1, 128], strides = [1, 1]} : vector<3x128xf32> to vector<1x128xf32>
    %93 = arith.mulf %91, %92 : vector<1x128xf32>
    %94 = arith.addf %88, %93 : vector<1x128xf32>
    %95 = arith.addf %17, %94 : vector<1x128xf32>
    %c0_21 = arith.constant 0 : index
    %c0_22 = arith.constant 0 : index
    %96 = vector.load %arg8[%c0_21, %c0_22] : memref<1x128xf32, #tpu.memory_space<vmem>>, vector<1x128xf32>
    tpu.vector_store %arg8[%c0_21, %c0_22], %95 {strides = array<i32>} : memref<1x128xf32, #tpu.memory_space<vmem>>, vector<1x128xf32>,
    return
  }
  func.func @transform_0(%arg0: i32) -> (i32, i32) {
    %c0_i32 = arith.constant 0 : i32
    %c0_i32_0 = arith.constant 0 : i32
    return %c0_i32, %arg0 : i32, i32
  }
  func.func @transform_1(%arg0: i32) -> (i32, i32) {
    %c0_i32 = arith.constant 0 : i32
    %c0_i32_0 = arith.constant 0 : i32
    return %c0_i32, %arg0 : i32, i32
  }
  func.func @transform_2(%arg0: i32) -> (i32, i32) {
    %c0_i32 = arith.constant 0 : i32
    %c0_i32_0 = arith.constant 0 : i32
    %c0_i32_1 = arith.constant 0 : i32
    return %c0_i32, %c0_i32_0 : i32, i32
  }
  func.func @transform_3(%arg0: i32) -> (i32, i32) {
    %c0_i32 = arith.constant 0 : i32
    %c0_i32_0 = arith.constant 0 : i32
    %c0_i32_1 = arith.constant 0 : i32
    return %c0_i32, %c0_i32_0 : i32, i32
  }
  func.func @transform_4(%arg0: i32) -> (i32, i32) {
    %c0_i32 = arith.constant 0 : i32
    %c0_i32_0 = arith.constant 0 : i32
    %c0_i32_1 = arith.constant 0 : i32
    return %c0_i32, %c0_i32_0 : i32, i32
  }
  func.func @transform_5(%arg0: i32) -> (i32, i32) {
    %c0_i32 = arith.constant 0 : i32
    %c0_i32_0 = arith.constant 0 : i32
    %c0_i32_1 = arith.constant 0 : i32
    return %c0_i32, %c0_i32_0 : i32, i32
  }
  func.func @transform_6(%arg0: i32) -> (i32, i32) {
    %c0_i32 = arith.constant 0 : i32
    %c0_i32_0 = arith.constant 0 : i32
    %c0_i32_1 = arith.constant 0 : i32
    return %c0_i32, %c0_i32_0 : i32, i32
  }
  func.func @transform_7(%arg0: i32) -> (i32, i32) {
    %c0_i32 = arith.constant 0 : i32
    %c0_i32_0 = arith.constant 0 : i32
    return %c0_i32, %arg0 : i32, i32
  }
}

</mosaic_0001>

<bundles_post_ra>
// kernel: tpu_custom_call.1
= control target key start
LH: loop header
LB: loop body
LE: loop exit
PB: predicated region body
PF: predicated region fallthrough
CT: control target
= control target key end

     0   :  { %vm65_vm0 = vcmask 64512   ;;  %v27_v2 = vlaneseq  ;;  %v658_v3 = vmov 0.0   ;;  %vm659_vm1 = vmmov 0   ;;  %s772_s0 = inlined_call_operand.vmem [shape: s32[5,128], index: 0, kind: input, shape index: {}]   ;;  %s773_s1 = inlined_call_operand.vmem [shape: f32[8,128], index: 1, kind: input, shape index: {}]   ;;  %s774_s2 = inlined_call_operand.vmem [shape: f32[1,18], index: 2, kind: input, shape index: {}]   ;;  %s775_s3 = inlined_call_operand.vmem [shape: f32[3,2], index: 3, kind: input, shape index: {}]   ;;  %s776_s4 = inlined_call_operand.vmem [shape: f32[9,3], index: 4, kind: input, shape index: {}]   ;;  %s777_s5 = inlined_call_operand.vmem [shape: f32[3,4], index: 5, kind: input, shape index: {}]   ;;  %s778_s6 = inlined_call_operand.vmem [shape: f32[1,8], index: 6, kind: input, shape index: {}]   ;;  %s779_s7 = inlined_call_operand.hbm [shape: f32[1,128], index: 7, kind: output, shape index: {}]  }
   0x1   :  { %v64_v0 = vld [vmem:[%s773_s1] sm:$0xff]  ;;  %604 = vmatprep.subr.mxu0 %v658_v3  ;;  %606 = vmatprep.mubr.msk.f32.mxu0 %vm659_vm1, %v658_v3  ;;  %vm143_vm2 = vcmask 1041408   ;;  %vm242_vm3 = vcmask 15360   ;;  %vm328_vm4 = vcmask 1042432   ;;  %vm321_vm5 = vcmask 23552  }
   0x2   :  { %v63_v1 = vld [vmem:[%s778_s6] sm:$0x1]  ;;  %v578_v4 = vld [vmem:[%s772_s0 + $0x2] ss:$0 sm:$0xff]  ;;  %605 = vmatpush3.msra.mxu0 %v64_v0  ;;  %v28_v5 = vshrl.u32 %v27_v2, 7  ;;  %609 = vmatprep.subr.mxu1 %v658_v3 }
   0x3   :  { %v580_v6 = vld [vmem:[%s772_s0 + $0x3] ss:$0 sm:$0xff]  ;;  %607 = vmatmul.mubr.msk.f32.vlgmr.msra.gmra.mxu0 %vm65_vm0, %v63_v1  ;;  %618 = vmatprep.subr.mxu0 %v658_v3  ;;  %v567_v7 = vld [vmem:[%s772_s0] ss:$0 sm:$0xff]  ;;  %v571_v8 = vld [vmem:[%s772_s0 + $0x1] ss:$0 sm:$0xff] }
   0x4   :  { %vm222_vm6 = vcmp.eq.s32.totalorder %v28_v5, %v578_v4  ;;  %620 = vmatprep.mubr.msk.f32.mxu0 %vm659_vm1, %v658_v3  ;;  %v241_v9 = vld [vmem:[%s775_s3] sm:$0x7]  ;;  %vm230_vm7 = vcmp.eq.s32.totalorder %v28_v5, %v580_v6  ;;  %v30_v10 = vadd.s32 16, %v28_v5  ;;  %v29_v11 = vadd.s32 8, %v28_v5  ;;  %615 = vmatprep.mubr.msk.f32.mxu1 %vm659_vm1, %v658_v3 }
   0x5   :  { %v579_v12 = vsel %vm222_vm6, 1.0, %v658_v3  ;;  %v581_v13 = vsel %vm230_vm7, 1.0, %v658_v3  ;;  %v319_v14 = vld [vmem:[%s776_s4] sm:$0xff]  ;;  %vm36_vm8 = vcmp.eq.s32.totalorder %v28_v5, %v567_v7  ;;  %vm50_vm9 = vcmp.eq.s32.totalorder %v28_v5, %v571_v8 }
   0x6   :  { %12 = vsyncpa [#allocation3], 0  ;;  %619 = vmatpush3.msk.msra.mxu0 %vm143_vm2, %v579_v12  ;;  %vm38_vm10 = vcmp.eq.s32.totalorder %v30_v10, %v567_v7  ;;  %vm52_vm11 = vcmp.eq.s32.totalorder %v30_v10, %v571_v8  ;;  %vm37_vm12 = vcmp.eq.s32.totalorder %v29_v11, %v567_v7  ;;  %vm51_vm13 = vcmp.eq.s32.totalorder %v29_v11, %v571_v8  ;;  %v582_v19 = vld [vmem:[%s772_s0 + $0x4] ss:$0 sm:$0xff]  ;;  %v320_v21 = vld [vmem:[%s776_s4 + $0x8] sm:$0x1] }
   0x7   :  { %621 = vmatmul.mubr.msk.f32.vlgmr.msra.gmra.mxu0 %vm242_vm3, %v241_v9  ;;  %623 = vmatprep.subr.msk.mxu0 %vm328_vm4, %v581_v13  ;;  %v570_v15 = vsel %vm38_vm10, 1.0, %v658_v3  ;;  %v574_v16 = vsel %vm52_vm11, 1.0, %v658_v3  ;;  %v569_v17 = vsel %vm37_vm12, 1.0, %v658_v3  ;;  %v573_v18 = vsel %vm51_vm13, 1.0, %v658_v3  ;;  %v62_v26 = vld [vmem:[%s774_s2] sm:$0x1] }
   0x8   :  { %v61_v20 = vadd.f32 %v574_v16, %v570_v15  ;;  %624 = vmatpush3.msk.msra.mxu0 %vm328_vm4, %v581_v13  ;;  %625 = vmatprep.mubr.msk.f32.mxu0 %vm321_vm5, %v319_v14  ;;  %v60_v22 = vadd.f32 %v573_v18, %v569_v17  ;;  %v568_v23 = vsel %vm36_vm8, 1.0, %v658_v3  ;;  %v572_v24 = vsel %vm50_vm9, 1.0, %v658_v3  ;;  %v407_v28 = vld [vmem:[%s777_s5] sm:$0x7]  ;;  %s660_s2 = smov [#allocation2]  }
   0x9   :  { %v59_v25 = vadd.f32 %v572_v24, %v568_v23  ;;  %vm238_vm14 = vcmp.eq.s32.totalorder %v28_v5, %v582_v19  ;;  %vm139_vm15 = vcmask 146432   ;;  %vm412_vm0 = vcmask 1043456   ;;  %s559_s5 = sshll.u32 %s660_s2, 4  ;;  %s560_s5 = int_to_ptr.vmem [resolvable:$true] %s559_s5 }
   0xa   :  { %610 = vmatpush3.msk.msra.mxu1 %vm143_vm2, %v61_v20  ;;  %v583_v27 = vsel %vm238_vm14, 1.0, %v658_v3  ;;  %vm408_vm2 = vcmask 31744   ;;  %s636_s20 = scalar_lea.vmem %s560_s5, 16  ;;  %s640_s21 = scalar_lea.vmem %s560_s5, 32 }
   0xb   :  { %611 = vmatprep.subr.mxu1 %v658_v3  ;;  %626 = vmatmul.mubr.msk.f32.vlgmr.msra.gmra.mxu0 %vm321_vm5, %v320_v21  ;;  %p637_p0 = scmp.ne.s32.totalorder %s560_s5, %s636_s20  ;;  %p641_p1 = scmp.lt.s32.totalorder %s560_s5, %s560_s5 }
   0xc   :  { %612 = vmatpush3.msra.mxu1 %v60_v22  ;;  %p642_p2 = scmp.lt.s32.totalorder %s640_s21, %s636_s20 }
   0xd   :  { %613 = vmatprep.subr.mxu1 %v658_v3 }
   0xe   :  { %614 = vmatpush3.msra.mxu1 %v59_v25  ;;  %p643_p3 = por %p642_p2, %p641_p1 }
   0xf   :  { %616 = vmatmul.mubr.msk.f32.vlgmr.msra.gmra.mxu1 %vm139_vm15, %v62_v26  ;;  %628 = vmatprep.subr.mxu1 %v658_v3 }
  0x10   :  { %629 = vmatpush3.msk.msra.mxu1 %vm412_vm0, %v583_v27  ;;  %630 = vmatprep.mubr.msk.f32.mxu1 %vm659_vm1, %v658_v3  ;;  %p644_p4 = pnand %p643_p3, %p637_p0 }
  0x13   :  { %631 = vmatmul.mubr.msk.f32.vlgmr.msra.gmra.mxu1 %vm408_vm2, %v407_v28 }
  0xc3   :  { %v135_v29 = vpop.f32.mrf.mxu0 }
  0xc5   :  { %v608_v30 = vpop.f32.mrf.mxu0 }
  0xc7   :  { %v315_v31 = vpop.f32.mrf.mxu0 }
  0xc9   :  { %v622_v32 = vpop.f32.mrf.mxu0 }
  0xcb   :  { %v627_v33 = vpop.f32.mrf.mxu0 }
  0xcc   :  { %v543_v59 = vrot.slane %v627_v33, 6 }
  0xcd   :  { %v398_v34 = vpop.f32.mrf.mxu0 }
  0xce   :  { %v489_v35 = vrot.slane %v398_v34, 1  ;;  %v497_v37 = vrot.slane %v398_v34, 2  ;;  %v511_v39 = vrot.slane %v398_v34, 3  ;;  %v486_v40 = vmul.f32 %v398_v34, %v315_v31 }
  0xcf   :  { %v213_v36 = vpop.f32.mrf.mxu1  ;;  %v519_v42 = vrot.slane %v398_v34, 4  ;;  %v534_v54 = vrot.slane %v398_v34, 5  ;;  %v545_v3 = vmul.f32 %v543_v59, %v315_v31 }
  0xd0   :  { %v491_v41 = vmul.f32 %v489_v35, %v315_v31  ;;  %v499_v44 = vmul.f32 %v497_v37, %v315_v31  ;;  %v513_v49 = vmul.f32 %v511_v39, %v315_v31  ;;  %v214_v14 = vadd.f32 %v213_v36, %v135_v29 }
  0xd1   :  { %v617_v38 = vpop.f32.mrf.mxu1  ;;  %v521_v53 = vmul.f32 %v519_v42, %v315_v31  ;;  %v536_v63 = vmul.f32 %v534_v54, %v315_v31 }
  0xd3   :  { %v482_v43 = vpop.f32.mrf.mxu1 }
  0xd4   :  { %v500_v45 = vrot.slane %v482_v43, 2  ;;  %v493_v46 = vrot.slane %v482_v43, 1  ;;  %v504_v47 = vrot.slane %v482_v43, 7  ;;  %v487_v50 = vmul.f32 %v486_v40, %v482_v43 }
  0xd5   :  { %v632_v48 = vpop.f32.mrf.mxu1  ;;  %v514_v57 = vmul.f32 %v513_v49, %v482_v43  ;;  %v527_v58 = vrot.slane %v482_v43, 6  ;;  %v546_v9 = vmul.f32 %v545_v3, %v482_v43 }
  0xd6   :  { %v495_v51 = vmul.f32 %v493_v46, %v491_v41  ;;  %v506_v52 = vmul.f32 %v504_v47, %v499_v44  ;;  %v502_v55 = vmul.f32 %v500_v45, %v499_v44  ;;  %v522_v62 = vmul.f32 %v521_v53, %v493_v46 }
  0xd7   :  { %v516_v1 = vrot.slane %v514_v57, 1  ;;  %v529_v2 = vmul.f32 %v527_v58, %v521_v53  ;;  %v537_v6 = vmul.f32 %v536_v63, %v504_v47  ;;  %v548_v13 = vrot.slane %v546_v9, 2 }
  0xd8   :  { %v496_v56 = vadd.f32 %v495_v51, %v487_v50  ;;  %v508_v61 = vrot.slane %v506_v52, 1  ;;  %v524_v5 = vrot.slane %v522_v62, 1 }
  0xd9   :  { %v531_v8 = vrot.slane %v529_v2, 2  ;;  %v539_v11 = vrot.slane %v537_v6, 2 }
  0xda   :  { %v503_v60 = vadd.f32 %v502_v55, %v496_v56 }
  0xdc   :  { %v510_v0 = vadd.f32 %v508_v61, %v503_v60 }
  0xde   :  { %v518_v4 = vadd.f32 %v516_v1, %v510_v0 }
  0xe0   :  { %v526_v7 = vadd.f32 %v524_v5, %v518_v4 }
  0xe2   :  { %v533_v10 = vadd.f32 %v531_v8, %v526_v7 }
  0xe4   :  { %v541_v12 = vadd.f32 %v539_v11, %v533_v10 }
  0xe6   :  { %v550_v15 = vadd.f32 %v548_v13, %v541_v12 }
  0xe8   :  { %v551_v16 = vadd.f32 %v550_v15, %v214_v14 }
  0xea   :  { %552 = vst [vmem:[#allocation2] sm:$0x1] %v551_v16 }
  0xeb   :  { %647 = shalt.err (!%p644_p4)
}
  0xec   :  { %562 = dma.vmem_to_hbm [thread:$0]  %s560_s5, 16, %s779_s7, [#allocation3]  }
  0xed   :  { %656 = dma.done.wait [#allocation3], 16  }
  0xee   :  { %657 = vsyncadd [#allocation3], 4294967280 }
  0xef   :  { %566 = vsyncpa [#allocation3], 1 }

</bundles_post_ra>
